<compile_context>
chip_gen: v7x
topology: tpu7x:2x2x1
jax: 0.10.0
libtpu: 0.0.40
codegen_flags: <defaults>
</compile_context>

<pallas_src>
import functools

import jax
import jax.numpy as jnp
from jax.experimental import pallas as pl
from jax.experimental.pallas import tpu as pltpu


def _max_prob_kernel(x_ref, o_ref, acc_ref, *, cls_id, num_cls, hw, thw,
                     needs_mask):
    # x_ref  : (bt, 5, 5+num_cls, THW) VMEM block — bt batch elems, all anchors,
    #          one spatial tile.
    # o_ref  : (bt, 5, 1, 1) per-(batch, anchor) max (written on last tile).
    # acc_ref: (bt, 5, 1, THW) f32 VMEM vector running max across spatial tiles.
    t = pl.program_id(1)
    last = pl.num_programs(1) - 1

    @pl.when(t == 0)
    def _():
        acc_ref[...] = jnp.full_like(acc_ref, -jnp.inf)

    x = x_ref[...].astype(jnp.float32)                 # (bt, 5, rows, THW)
    objectness = jax.nn.sigmoid(x[:, :, 4:5, :])       # (bt, 5, 1, THW)
    cls_logits = x[:, :, 5:5 + num_cls, :]             # (bt, 5, C, THW)

    # Numerically-stable softmax over the class axis.
    m = jnp.max(cls_logits, axis=2, keepdims=True)     # (bt, 5, 1, THW)
    e = jnp.exp(cls_logits - m)                        # (bt, 5, C, THW)
    denom = jnp.sum(e, axis=2, keepdims=True)          # (bt, 5, 1, THW)
    # Exact divide (not approx reciprocal) to stay bit-close to the reference;
    # the kernel is HBM-bound so this is off the critical path.
    cls_prob = e[:, :, cls_id:cls_id + 1, :] / denom   # (bt, 5, 1, THW)

    conf = objectness * cls_prob                       # loss_target(obj, cls)

    if needs_mask:
        # Mask is only needed (and only emitted) on the final partial tile.
        @pl.when(t != last)
        def _():
            acc_ref[...] = jnp.maximum(acc_ref[...], conf)

        @pl.when(t == last)
        def _():
            lane = jax.lax.broadcasted_iota(jnp.int32, (1, 1, 1, thw), 3)
            valid = (t * thw + lane) < hw
            acc_ref[...] = jnp.maximum(acc_ref[...],
                                       jnp.where(valid, conf, -jnp.inf))
    else:
        acc_ref[...] = jnp.maximum(acc_ref[...], conf)

    @pl.when(t == last)
    def _():
        # Single cross-lane reduction, once per (batch block).
        o_ref[...] = jnp.max(acc_ref[...], axis=-1, keepdims=True)


def max_prob_extractor(yolo_output, cls_id, num_cls, *,
                       max_block_bytes=4 * 1024 * 1024):
    """JAX/Pallas equivalent of MaxProbExtractor.forward.

    yolo_output: (B, (5+num_cls)*5, H, W) float32/bfloat16 (NCHW, as in PyTorch),
                 or 3D (C, H, W) which is unsqueezed to batch=1.
    Returns: (B,) float32 max confidences.
    """
    if yolo_output.ndim == 3:
        yolo_output = yolo_output[None]
    b, c, h, w = yolo_output.shape
    assert c == (5 + num_cls) * 5, "channel dim must be (5 + num_cls) * 5"
    hw = h * w
    rows = 5 + num_cls

    # Free view (no transpose, no dtype upcast): (B, 5, 5+C, H*W).
    x = yolo_output.reshape(b, 5, rows, hw)

    # Block sizing.  Budget accounts for sublane padding (rows -> ceil(rows/8)*8).
    itemsize = jnp.dtype(x.dtype).itemsize
    rows_pad = ((rows + 7) // 8) * 8
    per_lane_bytes = 5 * rows_pad * itemsize           # bytes per spatial lane / batch elem
    budget_lanes = max(128, (max_block_bytes // per_lane_bytes) // 128 * 128)

    if hw > budget_lanes:
        # Large feature map: tile the spatial axis, one batch element per step.
        thw, bt = budget_lanes, 1
    else:
        # Small feature map: whole spatial extent in one tile; fold batch
        # elements into the block until the byte budget is filled.
        thw = hw
        slab_bytes = per_lane_bytes * hw
        bt_cap = max(1, max_block_bytes // slab_bytes)
        bt = max(d for d in range(1, b + 1) if b % d == 0 and d <= bt_cap)

    n_b = b // bt
    n_tiles = pl.cdiv(hw, thw)
    needs_mask = (hw % thw) != 0

    kernel = functools.partial(
        _max_prob_kernel, cls_id=cls_id, num_cls=num_cls, hw=hw, thw=thw,
        needs_mask=needs_mask)

    partial_max = pl.pallas_call(
        kernel,
        out_shape=jax.ShapeDtypeStruct((b, 5, 1, 1), jnp.float32),
        grid_spec=pltpu.PrefetchScalarGridSpec(
            num_scalar_prefetch=0,
            grid=(n_b, n_tiles),
            in_specs=[pl.BlockSpec(
                (bt, 5, rows, thw),
                lambda bi, ti: (bi, 0, 0, ti))],
            out_specs=pl.BlockSpec(
                (bt, 5, 1, 1),
                lambda bi, ti: (bi, 0, 0, 0)),
            scratch_shapes=[pltpu.VMEM((bt, 5, 1, thw), jnp.float32)],
        ),
        compiler_params=pltpu.CompilerParams(
            dimension_semantics=("parallel", "arbitrary"),
            vmem_limit_bytes=32 * 1024 * 1024),
    )(x)

    # Tiny (B, 5) -> (B,) reduction over anchors in plain JAX.
    return jnp.max(partial_max.reshape(b, 5), axis=1)


def _reference(yolo_output, cls_id, num_cls):
    # Pure-JAX reference mirroring the PyTorch forward exactly.
    b, c, h, w = yolo_output.shape
    x = yolo_output.astype(jnp.float32).reshape(b, 5, 5 + num_cls, h * w)
    x = jnp.transpose(x, (0, 2, 1, 3)).reshape(b, 5 + num_cls, 5 * h * w)
    objectness = jax.nn.sigmoid(x[:, 4, :])
    normal_confs = jax.nn.softmax(x[:, 5:5 + num_cls, :], axis=1)
    confs_for_class = normal_confs[:, cls_id, :]
    confs_if_object = objectness * confs_for_class
    return jnp.max(confs_if_object, axis=1)


if __name__ == "__main__":
    cls_id = 0
    num_cls = 4                     # -> channels = (5 + 4) * 5 = 45
    batch, h, w = 2, 16, 16

    key = jax.random.PRNGKey(0)
    x = jax.random.normal(key, (batch, (5 + num_cls) * 5, h, w), dtype=jnp.float32)

    # Path 1: small feature map -> batch folded into the block, single tile.
    max_conf = jax.block_until_ready(max_prob_extractor(x, cls_id, num_cls))
    ref = _reference(x, cls_id, num_cls)
    assert max_conf.shape == (batch,)
    assert jnp.allclose(max_conf, ref, atol=1e-5, rtol=1e-5), (max_conf, ref)

    # Path 2: multi-tile + partial-lane-mask (H*W = 169, forced 128-lane tiles).
    h2 = w2 = 13
    x2 = jax.random.normal(jax.random.PRNGKey(1),
                           (1, (5 + num_cls) * 5, h2, w2), dtype=jnp.float32)
    max_conf2 = jax.block_until_ready(
        max_prob_extractor(x2, cls_id, num_cls, max_block_bytes=64 * 1024))
    ref2 = _reference(x2, cls_id, num_cls)
    assert jnp.allclose(max_conf2, ref2, atol=1e-5, rtol=1e-5), (max_conf2, ref2)

    # Path 3: 3-D input (C, H, W) -> unsqueezed to batch 1.
    max_conf3 = jax.block_until_ready(max_prob_extractor(x[0], cls_id, num_cls))
    assert jnp.allclose(max_conf3, ref[:1], atol=1e-5, rtol=1e-5), (max_conf3, ref[:1])

    print("KERNEL_OK")
</pallas_src>

<mosaic_0001>
module attributes {stable_mosaic.version = 11 : i64} {
  func.func @_max_prob_kernel(%arg0: i32, %arg1: i32, %arg2: memref<2x5x9x256xf32, #tpu.memory_space<vmem>>, %arg3: memref<2x5x1x1xf32, #tpu.memory_space<vmem>>, %arg4: memref<2x5x1x256xf32, #tpu.memory_space<vmem>>) attributes {dimension_semantics = [#tpu.dimension_semantics<parallel>, #tpu.dimension_semantics<arbitrary>], iteration_bounds = array<i64: 1, 1>, scalar_prefetch = 0 : i64, scratch_operands = 1 : i64, tpu.core_type = #tpu.core_type<tc>, window_params = [{transform_indices = @transform_0, window_bounds = array<i64: 2, 5, 9, 256>}, {transform_indices = @transform_1, window_bounds = array<i64: 2, 5, 1, 1>}]} {
    %c0_i32 = arith.constant 0 : i32
    %0 = arith.cmpi eq, %arg1, %c0_i32 : i32
    %1 = arith.extui %0 : i1 to i32
    %c0_i32_0 = arith.constant 0 : i32
    %2 = arith.cmpi ne, %1, %c0_i32_0 : i32
    scf.if %2 {
      %cst_16 = arith.constant 0xFF800000 : f32
      %27 = vector.broadcast %cst_16 : f32 to vector<2x5x1x256xf32>
      %c0_17 = arith.constant 0 : index
      %c0_18 = arith.constant 0 : index
      %c0_19 = arith.constant 0 : index
      %c0_20 = arith.constant 0 : index
      %28 = vector.load %arg4[%c0_17, %c0_18, %c0_19, %c0_20] : memref<2x5x1x256xf32, #tpu.memory_space<vmem>>, vector<2x5x1x256xf32>
      tpu.vector_store %arg4[%c0_17, %c0_18, %c0_19, %c0_20], %27 {strides = array<i32>} : memref<2x5x1x256xf32, #tpu.memory_space<vmem>>, vector<2x5x1x256xf32>,
    } else {
    }
    %c0 = arith.constant 0 : index
    %c0_1 = arith.constant 0 : index
    %c0_2 = arith.constant 0 : index
    %c0_3 = arith.constant 0 : index
    %3 = vector.load %arg2[%c0, %c0_1, %c0_2, %c0_3] : memref<2x5x9x256xf32, #tpu.memory_space<vmem>>, vector<2x5x9x256xf32>
    %4 = vector.extract_strided_slice %3 {offsets = [0, 0, 4, 0], sizes = [2, 5, 1, 256], strides = [1, 1, 1, 1]} : vector<2x5x9x256xf32> to vector<2x5x1x256xf32>
    %5 = arith.negf %4 : vector<2x5x1x256xf32>
    %6 = math.exp %5 : vector<2x5x1x256xf32>
    %cst = arith.constant 1.000000e+00 : f32
    %7 = vector.broadcast %cst : f32 to vector<2x5x1x256xf32>
    %8 = arith.addf %7, %6 : vector<2x5x1x256xf32>
    %9 = arith.divf %7, %8 : vector<2x5x1x256xf32>
    %10 = vector.extract_strided_slice %3 {offsets = [0, 0, 5, 0], sizes = [2, 5, 4, 256], strides = [1, 1, 1, 1]} : vector<2x5x9x256xf32> to vector<2x5x4x256xf32>
    %cst_4 = arith.constant dense<0xFF800000> : vector<2x5x256xf32>
    %11 = vector.multi_reduction <maximumf>, %10, %cst_4 [2] : vector<2x5x4x256xf32> to vector<2x5x256xf32>
    %12 = vector.shape_cast %11 : vector<2x5x256xf32> to vector<2x5x1x256xf32>
    %13 = vector.broadcast %12 : vector<2x5x1x256xf32> to vector<2x5x4x256xf32>
    %14 = arith.subf %10, %13 : vector<2x5x4x256xf32>
    %15 = math.exp %14 : vector<2x5x4x256xf32>
    %cst_5 = arith.constant dense<0.000000e+00> : vector<2x5x256xf32>
    %16 = vector.multi_reduction <add>, %15, %cst_5 [2] : vector<2x5x4x256xf32> to vector<2x5x256xf32>
    %17 = vector.shape_cast %16 : vector<2x5x256xf32> to vector<2x5x1x256xf32>
    %18 = vector.extract_strided_slice %15 {offsets = [0, 0, 0, 0], sizes = [2, 5, 1, 256], strides = [1, 1, 1, 1]} : vector<2x5x4x256xf32> to vector<2x5x1x256xf32>
    %19 = arith.divf %18, %17 : vector<2x5x1x256xf32>
    %20 = arith.mulf %9, %19 : vector<2x5x1x256xf32>
    %c0_6 = arith.constant 0 : index
    %c0_7 = arith.constant 0 : index
    %c0_8 = arith.constant 0 : index
    %c0_9 = arith.constant 0 : index
    %21 = vector.load %arg4[%c0_6, %c0_7, %c0_8, %c0_9] : memref<2x5x1x256xf32, #tpu.memory_space<vmem>>, vector<2x5x1x256xf32>
    %22 = arith.maximumf %21, %20 : vector<2x5x1x256xf32>
    %c0_10 = arith.constant 0 : index
    %c0_11 = arith.constant 0 : index
    %c0_12 = arith.constant 0 : index
    %c0_13 = arith.constant 0 : index
    %23 = vector.load %arg4[%c0_10, %c0_11, %c0_12, %c0_13] : memref<2x5x1x256xf32, #tpu.memory_space<vmem>>, vector<2x5x1x256xf32>
    tpu.vector_store %arg4[%c0_10, %c0_11, %c0_12, %c0_13], %22 {strides = array<i32>} : memref<2x5x1x256xf32, #tpu.memory_space<vmem>>, vector<2x5x1x256xf32>,
    %c0_i32_14 = arith.constant 0 : i32
    %24 = arith.cmpi eq, %arg1, %c0_i32_14 : i32
    %25 = arith.extui %24 : i1 to i32
    %c0_i32_15 = arith.constant 0 : i32
    %26 = arith.cmpi ne, %25, %c0_i32_15 : i32
    scf.if %26 {
      %c0_16 = arith.constant 0 : index
      %c0_17 = arith.constant 0 : index
      %c0_18 = arith.constant 0 : index
      %c0_19 = arith.constant 0 : index
      %27 = vector.load %arg4[%c0_16, %c0_17, %c0_18, %c0_19] : memref<2x5x1x256xf32, #tpu.memory_space<vmem>>, vector<2x5x1x256xf32>
      %cst_20 = arith.constant dense<0xFF800000> : vector<2x5x1xf32>
      %28 = vector.multi_reduction <maximumf>, %27, %cst_20 [3] : vector<2x5x1x256xf32> to vector<2x5x1xf32>
      %29 = vector.shape_cast %28 : vector<2x5x1xf32> to vector<2x5x1x1xf32>
      %c0_21 = arith.constant 0 : index
      %c0_22 = arith.constant 0 : index
      %c0_23 = arith.constant 0 : index
      %c0_24 = arith.constant 0 : index
      %30 = vector.load %arg3[%c0_21, %c0_22, %c0_23, %c0_24] : memref<2x5x1x1xf32, #tpu.memory_space<vmem>>, vector<2x5x1x1xf32>
      tpu.vector_store %arg3[%c0_21, %c0_22, %c0_23, %c0_24], %29 {strides = array<i32>} : memref<2x5x1x1xf32, #tpu.memory_space<vmem>>, vector<2x5x1x1xf32>,
    } else {
    }
    return
  }
  func.func @transform_0(%arg0: i32, %arg1: i32) -> (i32, i32, i32, i32) {
    %c0_i32 = arith.constant 0 : i32
    %c0_i32_0 = arith.constant 0 : i32
    %c0_i32_1 = arith.constant 0 : i32
    return %arg0, %c0_i32, %c0_i32_0, %arg1 : i32, i32, i32, i32
  }
  func.func @transform_1(%arg0: i32, %arg1: i32) -> (i32, i32, i32, i32) {
    %c0_i32 = arith.constant 0 : i32
    %c0_i32_0 = arith.constant 0 : i32
    %c0_i32_1 = arith.constant 0 : i32
    %c0_i32_2 = arith.constant 0 : i32
    return %arg0, %c0_i32, %c0_i32_0, %c0_i32_1 : i32, i32, i32, i32
  }
}

</mosaic_0001>

<bundles_post_ra>
// kernel: tpu_custom_call.1
= control target key start
LH: loop header
LB: loop body
LE: loop exit
PB: predicated region body
PF: predicated region fallthrough
CT: control target
= control target key end

     0   :  { %v12_v0 = vlaneseq  ;;  %vm186_vm0 = vcmask 1047557   ;;  %vm188_vm1 = vcmask 1040384   ;;  %v1494_v7 = vmov -inf   ;;  %s2180_s0 = inlined_call_operand.vmem [shape: f32[2,5,9,256], index: 0, kind: input, shape index: {}]   ;;  %s2181_s1 = inlined_call_operand.vmem [shape: f32[2,5,1,1], index: 1, kind: output, shape index: {}]  }
   0x1   :  { %v1509_v1 = vld [vmem:[%s2180_s0 + $0x40] sm:$0xff]  ;;  %v1514_v2 = vld [vmem:[%s2180_s0 + $0x48] sm:$0xff]  ;;  %v1519_v3 = vld [vmem:[%s2180_s0 + $0x50] sm:$0x1]  ;;  %v1495_v55 = vmov 1966171168  }
   0x2   :  { %vm1522_vm2 = vcmp.lt.s32.totalorder %v12_v0, 256  ;;  %v1529_v5 = vld [vmem:[%s2180_s0 + $0x58] sm:$0x1]  ;;  %v224_v6 = vsel %vm186_vm0, %v1509_v1, -inf  ;;  %v225_v8 = vsel %vm188_vm1, %v1519_v3, -inf  ;;  %v233_v9 = vsel %vm186_vm0, %v1514_v2, -inf }
   0x3   :  { %18 = vst.msk [vmem:[#allocation2 + $0x4] sm:$0x3] %vm1522_vm2, %v1494_v7  ;;  %v234_v10 = vsel %vm188_vm1, %v1529_v5, -inf  ;;  %16 = vst.msk [vmem:[#allocation2] sm:$0x3] %vm1522_vm2, %v1494_v7  ;;  %v1562_v11 = vld [vmem:[%s2180_s0] sm:$0xff]  ;;  %v226_v13 = vmax.f32 %v224_v6, %v225_v8  ;;  %v1620_v56 = vunpack.c.l.s4 %v1495_v55 }
   0x4   :  { %17 = vst.msk [vmem:[#allocation2 + $0x2] sm:$0x3] %vm1522_vm2, %v1494_v7  ;;  %19 = vst.msk [vmem:[#allocation2 + $0x6] sm:$0x3] %vm1522_vm2, %v1494_v7  ;;  %v1276_v12 = vmul.f32 -1.442695, %v1509_v1  ;;  %v235_v14 = vmax.f32 %v233_v9, %v234_v10 }
   0x5   :  { %20 = vst.msk [vmem:[#allocation2 + $0x8] sm:$0x3] %vm1522_vm2, %v1494_v7  ;;  %21 = vst.msk [vmem:[#allocation2 + $0xa] sm:$0x3] %vm1522_vm2, %v1494_v7  ;;  %v1568_v15 = vld [vmem:[%s2180_s0 + $0x10] sm:$0x1] }
   0x6   :  { %22 = vst.msk [vmem:[#allocation2 + $0xc] sm:$0x3] %vm1522_vm2, %v1494_v7  ;;  %23 = vst.msk [vmem:[#allocation2 + $0xe] sm:$0x3] %vm1522_vm2, %v1494_v7  ;;  %v227_v16 = vrot.slane %v226_v13, 4  ;;  %v236_v17 = vrot.slane %v235_v14, 4  ;;  %1294 = vpow2.f32 %v1276_v12 }
   0x7   :  { %24 = vst.msk [vmem:[#allocation2 + $0x10] sm:$0x3] %vm1522_vm2, %v1494_v7  ;;  %25 = vst.msk [vmem:[#allocation2 + $0x12] sm:$0x3] %vm1522_vm2, %v1494_v7  ;;  %v1573_v18 = vld [vmem:[%s2180_s0 + $0x8] sm:$0xff]  ;;  %v187_v20 = vsel %vm186_vm0, %v1562_v11, -inf }
   0x8   :  { %v1578_v19 = vld [vmem:[%s2180_s0 + $0x18] sm:$0x1]  ;;  %v1277_v21 = vmul.f32 -1.442695, %v1514_v2  ;;  %v228_v22 = vmax.f32 %v226_v13, %v227_v16  ;;  %v237_v23 = vmax.f32 %v235_v14, %v236_v17  ;;  %v189_v24 = vsel %vm188_vm1, %v1568_v15, -inf  ;;  %v1588_v25 = vld [vmem:[%s2180_s0 + $0x60] sm:$0xff] }
   0x9   :  { %v1272_v26 = vmul.f32 -1.442695, %v1562_v11  ;;  %v190_v27 = vmax.f32 %v187_v20, %v189_v24  ;;  %v197_v28 = vsel %vm186_vm0, %v1573_v18, -inf  ;;  %v198_v29 = vsel %vm188_vm1, %v1578_v19, -inf  ;;  %v1598_v30 = vld [vmem:[%s2180_s0 + $0x70] sm:$0x1] }
   0xa   :  { %v229_v31 = vrot.slane %v228_v22, 2  ;;  %v238_v32 = vrot.slane %v237_v23, 2  ;;  %v199_v33 = vmax.f32 %v197_v28, %v198_v29  ;;  %1296 = vpow2.f32 %v1277_v21  ;;  %v1605_v39 = vld [vmem:[%s2180_s0 + $0x68] sm:$0xff]  ;;  %v1610_v40 = vld [vmem:[%s2180_s0 + $0x78] sm:$0x1]  ;;  %v1636_v29 = vld [vmem:[%s2180_s0 + $0x20] sm:$0xff] }
   0xb   :  { %v191_v34 = vrot.slane %v190_v27, 4  ;;  %v242_v35 = vsel %vm186_vm0, %v1588_v25, -inf  ;;  %v243_v41 = vsel %vm188_vm1, %v1598_v30, -inf  ;;  %1298 = vpow2.f32 %v1272_v26 }
   0xc   :  { %v230_v36 = vmax.f32 %v228_v22, %v229_v31  ;;  %v239_v37 = vmax.f32 %v237_v23, %v238_v32  ;;  %v200_v38 = vrot.slane %v199_v33, 4  ;;  %v1273_v42 = vmul.f32 -1.442695, %v1573_v18 }
   0xd   :  { %v192_v43 = vmax.f32 %v190_v27, %v191_v34  ;;  %v244_v44 = vmax.f32 %v242_v35, %v243_v41  ;;  %v1278_v48 = vmul.f32 -1.442695, %v1588_v25  ;;  %v251_v51 = vsel %vm186_vm0, %v1605_v39, -inf  ;;  %v1643_v35 = vld [vmem:[%s2180_s0 + $0x28] sm:$0xff] }
   0xe   :  { %v231_v45 = vrot.slane %v230_v36, 1  ;;  %v240_v46 = vrot.slane %v239_v37, 1  ;;  %v201_v47 = vmax.f32 %v199_v33, %v200_v38  ;;  %v252_v52 = vsel %vm188_vm1, %v1610_v40, -inf }
   0xf   :  { %v193_v49 = vrot.slane %v192_v43, 2  ;;  %v245_v50 = vrot.slane %v244_v44, 4  ;;  %1300 = vpow2.f32 %v1273_v42  ;;  %v1279_v59 = vmul.f32 -1.442695, %v1605_v39 }
  0x10   :  { %v232_v53 = vmax.f32 %v230_v36, %v231_v45  ;;  %v241_v54 = vmax.f32 %v239_v37, %v240_v46  ;;  %v202_v57 = vrot.slane %v201_v47, 2  ;;  %v1295_v61 = vpop.eup %1294  ;;  %v253_v7 = vmax.f32 %v251_v51, %v252_v52  ;;  %v1648_v36 = vld [vmem:[%s2180_s0 + $0x30] sm:$0x1] }
  0x11   :  { %v194_v58 = vmax.f32 %v192_v43, %v193_v49  ;;  %v246_v60 = vmax.f32 %v244_v44, %v245_v50  ;;  %v1628_v9 = vshrl.u32 %v12_v0, 7  ;;  %1302 = vpow2.f32 %v1278_v48  ;;  %v1655_v44 = vld [vmem:[%s2180_s0 + $0x38] sm:$0x1] }
  0x12   :  { %v376_v62 = vsub.f32 %v1509_v1, %v232_v53  ;;  %v377_v63 = vsub.f32 %v1514_v2, %v241_v54  ;;  %v378_v6 = vsub.f32 %v1519_v3, %v232_v53  ;;  %v379_v8 = vsub.f32 %v1529_v5, %v241_v54 }
  0x13   :  { %v195_v10 = vrot.slane %v194_v58, 1  ;;  %v203_v16 = vmax.f32 %v201_v47, %v202_v57  ;;  %1304 = vpow2.f32 %v1279_v59  ;;  %v247_v1 = vrot.slane %v246_v60, 2 }
  0x14   :  { %v424_v12 = vmul.f32 1.442695, %v376_v62  ;;  %v426_v13 = vmul.f32 1.442695, %v377_v63  ;;  %v428_v14 = vmul.f32 1.442695, %v378_v6  ;;  %v1297_v17 = vpop.eup %1296  ;;  %v903_v26 = vunpack.c.0.s8 %v1620_v56 }
  0x15   :  { %v430_v20 = vmul.f32 1.442695, %v379_v8  ;;  %v196_v21 = vmax.f32 %v194_v58, %v195_v10  ;;  %v130_v2 = vadd.f32 1.0, %v1295_v61  ;;  %v204_v3 = vrot.slane %v203_v16, 1  ;;  %v1299_v23 = vpop.eup %1298 }
  0x16   :  { %1306 = vpow2.f32 %v424_v12  ;;  %v254_v22 = vrot.slane %v253_v7, 4  ;;  %v248_v24 = vmax.f32 %v246_v60, %v247_v1  ;;  %v131_v31 = vadd.f32 1.0, %v1297_v17 }
  0x17   :  { %1308 = vpow2.f32 %v426_v13  ;;  %v368_v0 = vsub.f32 %v1562_v11, %v196_v21  ;;  %v370_v5 = vsub.f32 %v1568_v15, %v196_v21  ;;  %v205_v27 = vmax.f32 %v203_v16, %v204_v3 }
  0x18   :  { %1310 = vpow2.f32 %v428_v14  ;;  %v255_v28 = vmax.f32 %v253_v7, %v254_v22  ;;  %vm528_vm3 = vcmask 1042432   ;;  %v249_v34 = vrot.slane %v248_v24, 1 }
  0x19   :  { %1312 = vpow2.f32 %v430_v20  ;;  %v408_v32 = vmul.f32 1.442695, %v368_v0  ;;  %v412_v33 = vmul.f32 1.442695, %v370_v5  ;;  %v369_v11 = vsub.f32 %v1573_v18, %v205_v27  ;;  %v1301_v37 = vpop.eup %1300 }
  0x1a   :  { %1314 = vrcp.f32 %v130_v2  ;;  %v371_v15 = vsub.f32 %v1578_v19, %v205_v27  ;;  %vm609_vm4 = vcmask 1043456   ;;  %v126_v38 = vadd.f32 1.0, %v1299_v23 }
  0x1b   :  { %1316 = vpow2.f32 %v408_v32  ;;  %v256_v41 = vrot.slane %v255_v28, 2  ;;  %v206_v18 = vsel %vm186_vm0, %v1636_v29, -inf  ;;  %v410_v19 = vmul.f32 1.442695, %v369_v11  ;;  %v1303_v45 = vpop.eup %1302 }
  0x1c   :  { %1318 = vpow2.f32 %v412_v33  ;;  %v414_v42 = vmul.f32 1.442695, %v371_v15  ;;  %v250_v43 = vmax.f32 %v248_v24, %v249_v34  ;;  %v207_v47 = vsel %vm188_vm1, %v1648_v36, -inf }
  0x1d   :  { %1320 = vrcp.f32 %v131_v31  ;;  %v257_v46 = vmax.f32 %v255_v28, %v256_v41  ;;  %v215_v48 = vsel %vm186_vm0, %v1643_v35, -inf  ;;  %v208_v51 = vmax.f32 %v206_v18, %v207_v47  ;;  %v1305_v52 = vpop.eup %1304 }
  0x1e   :  { %1322 = vpow2.f32 %v410_v19  ;;  %v380_v49 = vsub.f32 %v1588_v25, %v250_v43  ;;  %v382_v50 = vsub.f32 %v1598_v30, %v250_v43  ;;  %v127_v53 = vadd.f32 1.0, %v1301_v37 }
  0x1f   :  { %1324 = vpow2.f32 %v414_v42  ;;  %v258_v54 = vrot.slane %v257_v46, 1  ;;  %v216_v55 = vsel %vm188_vm1, %v1655_v44, -inf  ;;  %v209_v60 = vrot.slane %v208_v51, 4 }
  0x20   :  { %v1665_v57 = vpop.eup %1306  ;;  %1326 = vrcp.f32 %v126_v38  ;;  %v432_v58 = vmul.f32 1.442695, %v380_v49  ;;  %v436_v59 = vmul.f32 1.442695, %v382_v50  ;;  %v1671_v30 = vmul.f32 -1.442695, %v1636_v29 }
  0x21   :  { %v1667_v61 = vpop.eup %1308  ;;  %v541_v25 = vrot.slane %v1665_v57, 5  ;;  %v259_v62 = vmax.f32 %v257_v46, %v258_v54  ;;  %v217_v63 = vmax.f32 %v215_v48, %v216_v55  ;;  %v132_v8 = vadd.f32 1.0, %v1303_v45  ;;  %v1698_v48 = vld [vmem:[%s2180_s0 + $0xa0] sm:$0xff] }
  0x22   :  { %v1311_v6 = vpop.eup %1310  ;;  %v544_v7 = vrot.slane %v1667_v61, 5  ;;  %1328 = vpow2.f32 %v432_v58  ;;  %v210_v10 = vmax.f32 %v208_v51, %v209_v60  ;;  %v133_v21 = vadd.f32 1.0, %v1305_v52 }
  0x23   :  { %v1313_v12 = vpop.eup %1312  ;;  %v542_v13 = vrot.slane %v1311_v6, 5  ;;  %v381_v14 = vsub.f32 %v1605_v39, %v259_v62  ;;  %v383_v16 = vsub.f32 %v1610_v40, %v259_v62  ;;  %1330 = vpow2.f32 %v436_v59 }
  0x24   :  { %v1676_v17 = vpop.eup %1314  ;;  %v545_v20 = vrot.slane %v1313_v12, 5  ;;  %v211_v1 = vrot.slane %v210_v10, 2  ;;  %v218_v2 = vrot.slane %v217_v63, 4  ;;  %1332 = vrcp.f32 %v127_v53 }
  0x25   :  { %v1678_v3 = vpop.eup %1316  ;;  %v543_v22 = vsel %vm528_vm3, %v541_v25, %v542_v13  ;;  %v434_v23 = vmul.f32 1.442695, %v381_v14  ;;  %v438_v0 = vmul.f32 1.442695, %v383_v16  ;;  %v1275_v42 = vmul.f32 -1.442695, %v1643_v35 }
  0x26   :  { %v1319_v5 = vpop.eup %1318  ;;  %v546_v24 = vsel %vm528_vm3, %v544_v7, %v545_v20  ;;  %v638_v39 = vsel %vm609_vm4, %v543_v22, 0.0  ;;  %v529_v40 = vrot.slane %v1678_v3, 5  ;;  %v212_v27 = vmax.f32 %v210_v10, %v211_v1 }
  0x27   :  { %v1684_v28 = vpop.eup %1320  ;;  %v639_v31 = vrot.slane %v638_v39, 4  ;;  %v645_v32 = vsel %vm609_vm4, %v546_v24, 0.0  ;;  %v530_v33 = vrot.slane %v1319_v5, 5  ;;  %1334 = vpow2.f32 %v434_v23 }
  0x28   :  { %v1687_v11 = vpop.eup %1322  ;;  %v646_v15 = vrot.slane %v645_v32, 4  ;;  %1336 = vpow2.f32 %v438_v0  ;;  %v213_v34 = vrot.slane %v212_v27, 1  ;;  %v219_v37 = vmax.f32 %v217_v63, %v218_v2 }
  0x29   :  { %v1325_v38 = vpop.eup %1324  ;;  %v640_v41 = vadd.f32 %v639_v31, %v638_v39  ;;  %v531_v18 = vsel %vm528_vm3, %v529_v40, %v530_v33  ;;  %v532_v19 = vrot.slane %v1687_v11, 5  ;;  %1338 = vrcp.f32 %v132_v8 }
  0x2a   :  { %v1692_v43 = vpop.eup %1326  ;;  %v647_v45 = vadd.f32 %v646_v15, %v645_v32  ;;  %v533_v46 = vrot.slane %v1325_v38, 5  ;;  %v610_v47 = vsel %vm609_vm4, %v531_v18, 0.0  ;;  %v220_v51 = vrot.slane %v219_v37, 2 }
  0x2b   :  { %v641_v49 = vrot.slane %v640_v41, 2  ;;  %v611_v50 = vrot.slane %v610_v47, 4  ;;  %v1701_v52 = vmul.f32 -1.442695, %v1698_v48  ;;  %1340 = vrcp.f32 %v133_v21 }
  0x2c   :  { %v1703_v53 = vpop.eup %1328  ;;  %v648_v54 = vrot.slane %v647_v45, 2  ;;  %v534_v55 = vsel %vm528_vm3, %v532_v19, %v533_v46  ;;  %v214_v58 = vmax.f32 %v212_v27, %v213_v34  ;;  %1342 = vpow2.f32 %v1671_v30 }
  0x2d   :  { %v1331_v59 = vpop.eup %1330  ;;  %v642_v60 = vadd.f32 %v641_v49, %v640_v41  ;;  %v612_v25 = vadd.f32 %v611_v50, %v610_v47  ;;  %v617_v62 = vsel %vm609_vm4, %v534_v55, 0.0  ;;  %v547_v63 = vrot.slane %v1703_v53, 5 }
  0x2e   :  { %v649_v6 = vadd.f32 %v648_v54, %v647_v45  ;;  %v618_v7 = vrot.slane %v617_v62, 4  ;;  %v548_v8 = vrot.slane %v1331_v59, 5  ;;  %v1709_v10 = vpop.eup %1332  ;;  %1344 = vpow2.f32 %v1275_v42  ;;  %v1734_v54 = vld [vmem:[%s2180_s0 + $0xb0] sm:$0x1] }
  0x2f   :  { %v643_v12 = vrot.slane %v642_v60, 1  ;;  %v613_v13 = vrot.slane %v612_v25, 2  ;;  %v221_v14 = vmax.f32 %v219_v37, %v220_v51  ;;  %v372_v1 = vsub.f32 %v1636_v29, %v214_v58  ;;  %v1729_v51 = vld [vmem:[%s2180_s0 + $0xa8] sm:$0xff] }
  0x30   :  { %v650_v16 = vrot.slane %v649_v6, 1  ;;  %v619_v20 = vadd.f32 %v618_v7, %v617_v62  ;;  %v549_v21 = vsel %vm528_vm3, %v547_v63, %v548_v8  ;;  %v374_v30 = vsub.f32 %v1648_v36, %v214_v58 }
  0x31   :  { %v1713_v2 = vpop.eup %1334  ;;  %v644_v22 = vadd.f32 %v643_v12, %v642_v60  ;;  %v614_v23 = vadd.f32 %v613_v13, %v612_v25  ;;  %v652_v0 = vsel %vm609_vm4, %v549_v21, 0.0  ;;  %v222_v33 = vrot.slane %v221_v14, 1 }
  0x32   :  { %v1337_v5 = vpop.eup %1336  ;;  %v651_v24 = vadd.f32 %v650_v16, %v649_v6  ;;  %v620_v39 = vrot.slane %v619_v20, 2  ;;  %v550_v40 = vrot.slane %v1713_v2, 5  ;;  %v653_v27 = vrot.slane %v652_v0, 4 }
  0x33   :  { %1346 = vrcp.f32 %v644_v22  ;;  %v615_v31 = vrot.slane %v614_v23, 1  ;;  %v551_v32 = vrot.slane %v1337_v5, 5  ;;  %v1718_v15 = vpop.eup %1338  ;;  %v416_v37 = vmul.f32 1.442695, %v372_v1  ;;  %v1762_v5 = vld [vmem:[%s2180_s0 + $0x90] sm:$0x1] }
  0x34   :  { %1348 = vrcp.f32 %v651_v24  ;;  %v621_v29 = vadd.f32 %v620_v39, %v619_v20  ;;  %v654_v34 = vadd.f32 %v653_v27, %v652_v0  ;;  %v223_v36 = vmax.f32 %v221_v14, %v222_v33 }
  0x35   :  { %v616_v38 = vadd.f32 %v615_v31, %v614_v23  ;;  %v552_v41 = vsel %vm528_vm3, %v550_v40, %v551_v32  ;;  %v420_v18 = vmul.f32 1.442695, %v374_v30  ;;  %v1721_v19 = vpop.eup %1340  ;;  %1350 = vpow2.f32 %v416_v37  ;;  %v1757_v30 = vld [vmem:[%s2180_s0 + $0x80] sm:$0xff] }
  0x36   :  { %v622_v42 = vrot.slane %v621_v29, 1  ;;  %v655_v45 = vrot.slane %v654_v34, 2  ;;  %v659_v46 = vsel %vm609_vm4, %v552_v41, 0.0  ;;  %v373_v49 = vsub.f32 %v1643_v35, %v223_v36  ;;  %v1343_v55 = vpop.eup %1342  ;;  %v1739_v35 = vld [vmem:[%s2180_s0 + $0xb8] sm:$0x1] }
  0x37   :  { %1352 = vrcp.f32 %v616_v38  ;;  %v660_v47 = vrot.slane %v659_v46, 4  ;;  %v375_v50 = vsub.f32 %v1655_v44, %v223_v36  ;;  %v278_v44 = vsel %vm186_vm0, %v1698_v48, -inf }
  0x38   :  { %v623_v58 = vadd.f32 %v622_v42, %v621_v29  ;;  %v656_v59 = vadd.f32 %v655_v45, %v654_v34  ;;  %1354 = vpow2.f32 %v420_v18  ;;  %v1345_v60 = vpop.eup %1344  ;;  %v418_v62 = vmul.f32 1.442695, %v373_v49 }
  0x39   :  { %v661_v25 = vadd.f32 %v660_v47, %v659_v46  ;;  %v422_v63 = vmul.f32 1.442695, %v375_v50  ;;  %v1283_v6 = vmul.f32 -1.442695, %v1729_v51  ;;  %v279_v8 = vsel %vm188_vm1, %v1734_v54, -inf }
  0x3a   :  { %1356 = vrcp.f32 %v623_v58  ;;  %v657_v7 = vrot.slane %v656_v59, 1  ;;  %v287_v12 = vsel %vm186_vm0, %v1729_v51, -inf  ;;  %v280_v14 = vmax.f32 %v278_v44, %v279_v8 }
  0x3b   :  { %v662_v13 = vrot.slane %v661_v25, 2  ;;  %1358 = vpow2.f32 %v418_v62  ;;  %v288_v16 = vsel %vm188_vm1, %v1739_v35, -inf  ;;  %v1751_v22 = vsub.s32 0, %v1628_v9 }
  0x3c   :  { %v658_v20 = vadd.f32 %v657_v7, %v656_v59  ;;  %1360 = vpow2.f32 %v422_v63  ;;  %v289_v21 = vmax.f32 %v287_v12, %v288_v16  ;;  %v281_v0 = vrot.slane %v280_v14, 4 }
  0x3d   :  { %v1347_v1 = vpop.eup %1346  ;;  %v663_v23 = vadd.f32 %v662_v13, %v661_v25  ;;  %1362 = vpow2.f32 %v1701_v52  ;;  %v1768_v40 = vsub.s32 %v903_v26, %v1628_v9  ;;  %v260_v37 = vsel %vm186_vm0, %v1757_v30, -inf }
  0x3e   :  { %v1349_v24 = vpop.eup %1348  ;;  %v759_v39 = vmul.f32 %v1347_v1, %v1665_v57  ;;  %1364 = vrcp.f32 %v658_v20  ;;  %v290_v52 = vrot.slane %v289_v21, 4  ;;  %v282_v32 = vmax.f32 %v280_v14, %v281_v0 }
  0x3f   :  { %v761_v27 = vmul.f32 %v1349_v24, %v1667_v61  ;;  %v664_v31 = vrot.slane %v663_v23, 1  ;;  %1366 = vpow2.f32 %v1283_v6  ;;  %v1771_v33 = vpop.eup %1350  ;;  %v261_v57 = vsel %vm188_vm1, %v1762_v5, -inf }
  0x40   :  { %v814_v29 = vrot.slane %v759_v39, 1  ;;  %v291_v34 = vmax.f32 %v289_v21, %v290_v52  ;;  %v535_v41 = vrot.slane %v1771_v33, 5  ;;  %v283_v36 = vrot.slane %v282_v32, 2 }
  0x41   :  { %v1353_v56 = vpop.eup %1352  ;;  %v815_v26 = vrot.slane %v761_v27, 1  ;;  %v665_v38 = vadd.f32 %v664_v31, %v663_v23  ;;  %v1780_v45 = vadd.f32 1.0, %v1343_v55  ;;  %v1783_v44 = vadd.f32 1.0, %v1345_v60  ;;  %v872_v23 = vld [vmem:[#allocation2 + $0x4] sm:$0x3] }
  0x42   :  { %v1355_v61 = vpop.eup %1354  ;;  %v854_v18 = vmul.f32 %v1676_v17, %v814_v29  ;;  %v751_v42 = vmul.f32 %v1353_v56, %v1678_v3  ;;  %v292_v46 = vrot.slane %v291_v34, 2  ;;  %v284_v50 = vmax.f32 %v282_v32, %v283_v36 }
  0x43   :  { %v855_v47 = vmul.f32 %v1684_v28, %v815_v26  ;;  %1368 = vrcp.f32 %v665_v38  ;;  %v536_v49 = vrot.slane %v1355_v61, 5  ;;  %v1785_v62 = vmax.f32 %v260_v37, %v261_v57  ;;  %v1794_v28 = vld [vmem:[%s2180_s0 + $0x88] sm:$0xff]  ;;  %v1817_v26 = vld [vmem:[%s2180_s0 + $0x98] sm:$0x1] }
  0x44   :  { %v1357_v58 = vpop.eup %1356  ;;  %v810_v59 = vrot.slane %v751_v42, 1  ;;  %v293_v25 = vmax.f32 %v291_v34, %v292_v46  ;;  %v285_v6 = vrot.slane %v284_v50, 1  ;;  %vm1257_vm5 = vcmask 0  }
  0x45   :  { %v1787_v63 = vpop.eup %1358  ;;  %v930_v17 = vcombine.high %v854_v18, %v855_v47  ;;  %v753_v3 = vmul.f32 %v1357_v58, %v1687_v11  ;;  %v537_v55 = vsel %vm528_vm3, %v535_v41, %v536_v49  ;;  %v263_v39 = vrot.slane %v1785_v62, 4 }
  0x46   :  { %v1361_v7 = vpop.eup %1360  ;;  %v850_v60 = vmul.f32 %v1692_v43, %v810_v59  ;;  %v538_v8 = vrot.slane %v1787_v63, 5  ;;  %v624_v12 = vsel %vm609_vm4, %v537_v55, 0.0  ;;  %v294_v13 = vrot.slane %v293_v25, 1 }
  0x47   :  { %v1799_v14 = vpop.eup %1362  ;;  %v937_v11 = vrot.slane %v930_v17, %v1768_v40  ;;  %v811_v16 = vrot.slane %v753_v3, 1  ;;  %v539_v20 = vrot.slane %v1361_v7, 5  ;;  %v625_v21 = vrot.slane %v624_v12, 4 }
  0x48   :  { %v1365_v1 = vpop.eup %1364  ;;  %v286_v0 = vmax.f32 %v284_v50, %v285_v6  ;;  %v295_v24 = vmax.f32 %v293_v25, %v294_v13  ;;  %v269_v43 = vsel %vm186_vm0, %v1794_v28, -inf  ;;  %v270_v49 = vsel %vm188_vm1, %v1817_v26, -inf  ;;  %v870_v50 = vld [vmem:[#allocation2] sm:$0x3] }
  0x49   :  { %v1805_v52 = vpop.eup %1366  ;;  %v944_v27 = vrot.slane %v937_v11, %v1768_v40  ;;  %v851_v31 = vmul.f32 %v1709_v10, %v811_v16  ;;  %v763_v32 = vmul.f32 %v1365_v1, %v1703_v53  ;;  %v540_v29 = vsel %vm528_vm3, %v538_v8, %v539_v20 }
  0x4a   :  { %v626_v34 = vadd.f32 %v625_v21, %v624_v12  ;;  %v631_v37 = vsel %vm609_vm4, %v540_v29, 0.0  ;;  %v388_v57 = vsub.f32 %v1698_v48, %v286_v0  ;;  %v389_v56 = vsub.f32 %v1729_v51, %v295_v24 }
  0x4b   :  { %v1062_v38 = vmax.f32 %v872_v23, %v944_v27  ;;  %v900_v41 = vcombine.high %v850_v60, %v851_v31  ;;  %v816_v36 = vrot.slane %v763_v32, 1  ;;  %v632_v10 = vrot.slane %v631_v37, 4  ;;  %v873_v32 = vld [vmem:[#allocation2 + $0x6] sm:$0x3] }
  0x4c   :  { %v627_v61 = vrot.slane %v626_v34, 2  ;;  %v390_v53 = vsub.f32 %v1734_v54, %v286_v0  ;;  %v391_v18 = vsub.f32 %v1739_v35, %v295_v24  ;;  %v448_v42 = vmul.f32 1.442695, %v388_v57 }
  0x4d   :  { %v1369_v46 = vpop.eup %1368  ;;  %1076 = vst.msk [vmem:[#allocation2 + $0x4] sm:$0x3] %vm1522_vm2, %v1062_v38  ;;  %v907_v48 = vrot.slane %v900_v41, %v1768_v40  ;;  %v633_v51 = vadd.f32 %v632_v10, %v631_v37  ;;  %v450_v47 = vmul.f32 1.442695, %v389_v56  ;;  %v856_v55 = vmul.f32 %v1718_v15, %v816_v36 }
  0x4e   :  { %v765_v58 = vmul.f32 %v1369_v46, %v1713_v2  ;;  %v628_v59 = vadd.f32 %v627_v61, %v626_v34  ;;  %1370 = vpow2.f32 %v448_v42  ;;  %v452_v54 = vmul.f32 1.442695, %v390_v53 }
  0x4f   :  { %v914_v35 = vrot.slane %v907_v48, %v1768_v40  ;;  %v634_v25 = vrot.slane %v633_v51, 2  ;;  %1372 = vpow2.f32 %v450_v47  ;;  %v454_v17 = vmul.f32 1.442695, %v391_v18 }
  0x50   :  { %v817_v3 = vrot.slane %v765_v58, 1  ;;  %v629_v6 = vrot.slane %v628_v59, 1  ;;  %1374 = vpow2.f32 %v452_v54  ;;  %v1830_v7 = vsub.s32 1, %v1628_v9  ;;  %v1841_v9 = vld [vmem:[%s2180_s0 + $0xe0] sm:$0xff] }
  0x51   :  { %v1060_v60 = vmax.f32 %v870_v50, %v914_v35  ;;  %v635_v8 = vadd.f32 %v634_v25, %v633_v51  ;;  %1376 = vpow2.f32 %v454_v17  ;;  %v264_v13 = vmax.f32 %v1785_v62, %v263_v39  ;;  %v1853_v39 = vld [vmem:[%s2180_s0 + $0xf0] sm:$0x1] }
  0x52   :  { %v857_v2 = vmul.f32 %v1721_v19, %v817_v3  ;;  %1378 = vrcp.f32 %v1780_v45  ;;  %v630_v12 = vadd.f32 %v629_v6, %v628_v59  ;;  %v271_v11 = vmax.f32 %v269_v43, %v270_v49 }
  0x53   :  { %1074 = vst.msk [vmem:[#allocation2] sm:$0x3] %vm1522_vm2, %v1060_v60  ;;  %1380 = vrcp.f32 %v1783_v44  ;;  %v636_v15 = vrot.slane %v635_v8, 1  ;;  %v1280_v19 = vmul.f32 -1.442695, %v1757_v30  ;;  %v265_v45 = vrot.slane %v264_v13, 2 }
  0x54   :  { %v1089_v16 = vld [vmem:[#allocation2 + $0x4] sm:$0x3]  ;;  %v945_v20 = vcombine.high %v856_v55, %v857_v2  ;;  %1382 = vrcp.f32 %v630_v12  ;;  %v272_v23 = vrot.slane %v271_v11, 4  ;;  %v1848_v0 = vadd.f32 1.0, %v1799_v14 }
  0x55   :  { %v1126_v62 = vrot.slane %v1089_v16, %v1751_v22  ;;  %v1130_v21 = vrot.slane %v1089_v16, %v1830_v7  ;;  %v637_v1 = vadd.f32 %v636_v15, %v635_v8  ;;  %v266_v24 = vmax.f32 %v264_v13, %v265_v45  ;;  %v1887_v45 = vld [vmem:[%s2180_s0 + $0xe8] sm:$0xff] }
  0x56   :  { %v952_v44 = vrot.slane %v945_v20, %v1768_v40  ;;  %v314_v43 = vsel %vm186_vm0, %v1841_v9, -inf  ;;  %v273_v29 = vmax.f32 %v271_v11, %v272_v23  ;;  %v1863_v57 = vadd.f32 1.0, %v1805_v52 }
  0x57   :  { %v1217_v27 = vsel %vm188_vm1, %v1126_v62, -inf  ;;  %v1218_v31 = vsel %vm188_vm1, %v1130_v21, -inf  ;;  %1384 = vrcp.f32 %v637_v1  ;;  %v267_v56 = vrot.slane %v266_v24, 1 }
  0x58   :  { %v1859_v34 = vpop.eup %1370  ;;  %v1219_v14 = vmax.f32 %v1217_v27, %v1218_v31  ;;  %v959_v37 = vrot.slane %v952_v44, %v1768_v40  ;;  %1386 = vpow2.f32 %v1280_v19  ;;  %v274_v36 = vrot.slane %v273_v29, 2 }
  0x59   :  { %v1865_v38 = vpop.eup %1372  ;;  %v559_v41 = vrot.slane %v1859_v34, 5  ;;  %v315_v10 = vsel %vm188_vm1, %v1853_v39, -inf  ;;  %v268_v46 = vmax.f32 %v266_v24, %v267_v56  ;;  %v1281_v27 = vmul.f32 -1.442695, %v1794_v28 }
  0x5a   :  { %v1375_v61 = vpop.eup %1374  ;;  %1220 = vmax.xlane.f32.xlu1 %v1219_v14  ;;  %v1087_v53 = vld [vmem:[#allocation2] sm:$0x3]  ;;  %v1063_v18 = vmax.f32 %v873_v32, %v959_v37  ;;  %v562_v42 = vrot.slane %v1865_v38, 5  ;;  %v316_v48 = vmax.f32 %v314_v43, %v315_v10  ;;  %v275_v50 = vmax.f32 %v273_v29, %v274_v36 }
  0x5b   :  { %v1377_v52 = vpop.eup %1376  ;;  %v1110_v51 = vrot.slane %v1087_v53, %v1751_v22  ;;  %v1114_v47 = vrot.slane %v1087_v53, %v1830_v7  ;;  %v560_v49 = vrot.slane %v1375_v61, 5  ;;  %v384_v54 = vsub.f32 %v1757_v30, %v268_v46 }
  0x5c   :  { %v1379_v58 = vpop.eup %1378  ;;  %1077 = vst.msk [vmem:[#allocation2 + $0x6] sm:$0x3] %vm1522_vm2, %v1063_v18  ;;  %v563_v59 = vrot.slane %v1377_v52, 5  ;;  %v386_v35 = vsub.f32 %v1762_v5, %v268_v46  ;;  %v317_v25 = vrot.slane %v316_v48, 4  ;;  %v276_v60 = vrot.slane %v275_v50, 1 }
  0x5d   :  { %v1381_v17 = vpop.eup %1380  ;;  %v1207_v3 = vsel %vm188_vm1, %v1110_v51, -inf  ;;  %v1208_v55 = vsel %vm188_vm1, %v1114_v47, -inf  ;;  %v561_v6 = vsel %vm528_vm3, %v559_v41, %v560_v49  ;;  %v440_v15 = vmul.f32 1.442695, %v384_v54 }
  0x5e   :  { %v1383_v8 = vpop.eup %1382  ;;  %v1209_v2 = vmax.f32 %v1207_v3, %v1208_v55  ;;  %v564_v12 = vsel %vm528_vm3, %v562_v42, %v563_v59  ;;  %v680_v13 = vsel %vm609_vm4, %v561_v6, 0.0  ;;  %v277_v16 = vmax.f32 %v275_v50, %v276_v60 }
  0x5f   :  { %v755_v30 = vmul.f32 %v1383_v8, %v1771_v33  ;;  %v681_v11 = vrot.slane %v680_v13, 4  ;;  %v687_v5 = vsel %vm609_vm4, %v564_v12, 0.0  ;;  %1388 = vpow2.f32 %v440_v15 }
  0x60   :  { %1210 = vmax.xlane.f32.xlu0 %v1209_v2  ;;  %v688_v20 = vrot.slane %v687_v5, 4  ;;  %v444_v19 = vmul.f32 1.442695, %v386_v35  ;;  %v318_v62 = vmax.f32 %v316_v48, %v317_v25  ;;  %v385_v44 = vsub.f32 %v1794_v28, %v277_v16  ;;  %v1900_v28 = vld [vmem:[%s2180_s0 + $0xf8] sm:$0x1]  ;;  %v1911_v25 = vld [vmem:[%s2180_s0 + $0xc0] sm:$0xff] }
  0x61   :  { %v1385_v21 = vpop.eup %1384  ;;  %v812_v1 = vrot.slane %v755_v30, 1  ;;  %v682_v23 = vadd.f32 %v681_v11, %v680_v13  ;;  %v387_v33 = vsub.f32 %v1817_v26, %v277_v16  ;;  %v323_v56 = vsel %vm186_vm0, %v1887_v45, -inf  ;;  %v1925_v2 = vld [vmem:[%s2180_s0 + $0xc8] sm:$0xff] }
  0x62   :  { %v757_v24 = vmul.f32 %v1385_v21, %v1787_v63  ;;  %v689_v43 = vadd.f32 %v688_v20, %v687_v5  ;;  %1390 = vpow2.f32 %v444_v19  ;;  %v1387_v31 = vpop.eup %1386  ;;  %v442_v37 = vmul.f32 1.442695, %v385_v44  ;;  %v1937_v21 = vld [vmem:[%s2180_s0 + $0xd8] sm:$0x1] }
  0x63   :  { %v1090_v32 = vld [vmem:[#allocation2 + $0x6] sm:$0x3]  ;;  %v852_v29 = vmul.f32 %v1379_v58, %v812_v1  ;;  %v683_v14 = vrot.slane %v682_v23, 2  ;;  %v446_v63 = vmul.f32 1.442695, %v387_v33  ;;  %v319_v53 = vrot.slane %v318_v62, 2 }
  0x64   :  { %v1134_v41 = vrot.slane %v1090_v32, %v1751_v22  ;;  %v1138_v36 = vrot.slane %v1090_v32, %v1830_v7  ;;  %v813_v10 = vrot.slane %v757_v24, 1  ;;  %v690_v26 = vrot.slane %v689_v43, 2 }
  0x65   :  { %v684_v61 = vadd.f32 %v683_v14, %v682_v23  ;;  %1392 = vpow2.f32 %v442_v37  ;;  %v320_v47 = vmax.f32 %v318_v62, %v319_v53  ;;  %v324_v58 = vsel %vm188_vm1, %v1900_v28, -inf }
  0x66   :  { %v1222_v18 = vsel %vm188_vm1, %v1134_v41, -inf  ;;  %v1223_v42 = vsel %vm188_vm1, %v1138_v36, -inf  ;;  %v853_v46 = vmul.f32 %v1381_v17, %v813_v10  ;;  %v691_v48 = vadd.f32 %v690_v26, %v689_v43  ;;  %v1916_v17 = vld [vmem:[%s2180_s0 + $0xd0] sm:$0x1] }
  0x67   :  { %v1224_v52 = vmax.f32 %v1222_v18, %v1223_v42  ;;  %v685_v51 = vrot.slane %v684_v61, 1  ;;  %1394 = vpow2.f32 %v446_v63  ;;  %v321_v54 = vrot.slane %v320_v47, 1 }
  0x68   :  { %v915_v49 = vcombine.high %v852_v29, %v853_v46  ;;  %1396 = vrcp.f32 %v1848_v0  ;;  %v692_v50 = vrot.slane %v691_v48, 1  ;;  %v325_v35 = vmax.f32 %v323_v56, %v324_v58 }
  0x69   :  { %1225 = vmax.xlane.f32.xlu1 %v1224_v52  ;;  %1398 = vrcp.f32 %v1863_v57  ;;  %v686_v59 = vadd.f32 %v685_v51, %v684_v61  ;;  %v1918_v0 = vpop.eup %1388  ;;  %v871_v57 = vld [vmem:[#allocation2 + $0x2] sm:$0x3]  ;;  %v322_v60 = vmax.f32 %v320_v47, %v321_v54  ;;  %v296_v15 = vsel %vm186_vm0, %v1911_v25, -inf }
  0x6a   :  { %v922_v3 = vrot.slane %v915_v49, %v1768_v40  ;;  %v693_v55 = vadd.f32 %v692_v50, %v691_v48  ;;  %1400 = vpow2.f32 %v1281_v27  ;;  %v553_v6 = vrot.slane %v1918_v0, 5 }
  0x6b   :  { %1402 = vrcp.f32 %v686_v59  ;;  %v326_v8 = vrot.slane %v325_v35, 4  ;;  %v297_v30 = vsel %vm188_vm1, %v1916_v17, -inf  ;;  %v396_v16 = vsub.f32 %v1841_v9, %v322_v60 }
  0x6c   :  { %v1391_v12 = vpop.eup %1390  ;;  %v929_v13 = vrot.slane %v922_v3, %v1768_v40  ;;  %1404 = vrcp.f32 %v693_v55  ;;  %v398_v20 = vsub.f32 %v1853_v39, %v322_v60  ;;  %v134_v62 = vadd.f32 1.0, %v1387_v31 }
  0x6d   :  { %v554_v11 = vrot.slane %v1391_v12, 5  ;;  %v327_v5 = vmax.f32 %v325_v35, %v326_v8  ;;  %v298_v1 = vmax.f32 %v296_v15, %v297_v30  ;;  %v305_v23 = vsel %vm186_vm0, %v1925_v2, -inf }
  0x6e   :  { %v1061_v19 = vmax.f32 %v871_v57, %v929_v13  ;;  %v464_v43 = vmul.f32 1.442695, %v396_v16  ;;  %v468_v27 = vmul.f32 1.442695, %v398_v20  ;;  %v1286_v32 = vmul.f32 -1.442695, %v1841_v9 }
  0x6f   :  { %v1941_v44 = vpop.eup %1392  ;;  %v555_v33 = vsel %vm528_vm3, %v553_v6, %v554_v11  ;;  %v328_v24 = vrot.slane %v327_v5, 2  ;;  %v299_v29 = vrot.slane %v298_v1, 4  ;;  %v306_v41 = vsel %vm188_vm1, %v1937_v21, -inf }
  0x70   :  { %1075 = vst.msk [vmem:[#allocation2 + $0x2] sm:$0x3] %vm1522_vm2, %v1061_v19  ;;  %v556_v39 = vrot.slane %v1941_v44, 5  ;;  %v666_v31 = vsel %vm609_vm4, %v555_v33, 0.0  ;;  %1406 = vpow2.f32 %v464_v43  ;;  %v307_v61 = vmax.f32 %v305_v23, %v306_v41 }
  0x71   :  { %v1395_v14 = vpop.eup %1394  ;;  %v667_v37 = vrot.slane %v666_v31, 4  ;;  %v329_v56 = vmax.f32 %v327_v5, %v328_v24  ;;  %1408 = vpow2.f32 %v468_v27  ;;  %v300_v26 = vmax.f32 %v298_v1, %v299_v29  ;;  %v1968_v27 = vld [vmem:[%s2180_s0 + $0x120] sm:$0xff] }
  0x72   :  { %v1397_v36 = vpop.eup %1396  ;;  %v557_v10 = vrot.slane %v1395_v14, 5  ;;  %1410 = vrcp.f32 %v134_v62  ;;  %v1287_v46 = vmul.f32 -1.442695, %v1887_v45  ;;  %v308_v52 = vrot.slane %v307_v61, 4 }
  0x73   :  { %v1399_v63 = vpop.eup %1398  ;;  %v668_v53 = vadd.f32 %v667_v37, %v666_v31  ;;  %v330_v18 = vrot.slane %v329_v56, 1  ;;  %v301_v48 = vrot.slane %v300_v26, 2  ;;  %1412 = vpow2.f32 %v1286_v32 }
  0x74   :  { %v1401_v42 = vpop.eup %1400  ;;  %v558_v9 = vsel %vm528_vm3, %v556_v39, %v557_v10  ;;  %v309_v3 = vmax.f32 %v307_v61, %v308_v52  ;;  %v1973_v39 = vld [vmem:[%s2180_s0 + $0x130] sm:$0x1]  ;;  %v350_v61 = vsel %vm186_vm0, %v1968_v27, -inf }
  0x75   :  { %v1403_v51 = vpop.eup %1402  ;;  %v669_v47 = vrot.slane %v668_v53, 2  ;;  %v673_v49 = vsel %vm609_vm4, %v558_v9, 0.0  ;;  %v331_v50 = vmax.f32 %v329_v56, %v330_v18  ;;  %v302_v35 = vmax.f32 %v300_v26, %v301_v48 }
  0x76   :  { %v1405_v58 = vpop.eup %1404  ;;  %v771_v59 = vmul.f32 %v1403_v51, %v1859_v34  ;;  %v674_v54 = vrot.slane %v673_v49, 4  ;;  %v135_v29 = vadd.f32 1.0, %v1401_v42  ;;  %v310_v41 = vrot.slane %v309_v3, 2 }
  0x77   :  { %v1088_v55 = vld [vmem:[#allocation2 + $0x2] sm:$0x3]  ;;  %v773_v57 = vmul.f32 %v1405_v58, %v1865_v38  ;;  %v670_v6 = vadd.f32 %v669_v47, %v668_v53  ;;  %v397_v60 = vsub.f32 %v1887_v45, %v331_v50  ;;  %v399_v8 = vsub.f32 %v1900_v28, %v331_v50  ;;  %v875_v53 = vld [vmem:[#allocation2 + $0xa] sm:$0x3]  ;;  %v1995_v58 = vld [vmem:[%s2180_s0 + $0x138] sm:$0x1] }
  0x78   :  { %v1118_v12 = vrot.slane %v1088_v55, %v1751_v22  ;;  %v1122_v13 = vrot.slane %v1088_v55, %v1830_v7  ;;  %v820_v15 = vrot.slane %v771_v59, 1  ;;  %v675_v30 = vadd.f32 %v674_v54, %v673_v49  ;;  %v1990_v50 = vld [vmem:[%s2180_s0 + $0x128] sm:$0xff] }
  0x79   :  { %v821_v11 = vrot.slane %v773_v57, 1  ;;  %v671_v5 = vrot.slane %v670_v6, 1  ;;  %v466_v34 = vmul.f32 1.442695, %v397_v60  ;;  %v470_v16 = vmul.f32 1.442695, %v399_v8 }
  0x7a   :  { %v1212_v20 = vsel %vm188_vm1, %v1118_v12, -inf  ;;  %v1213_v19 = vsel %vm188_vm1, %v1122_v13, -inf  ;;  %v860_v38 = vmul.f32 %v1397_v36, %v820_v15  ;;  %v676_v62 = vrot.slane %v675_v30, 2  ;;  %v1962_v1 = vpop.eup %1406 }
  0x7b   :  { %v1214_v45 = vmax.f32 %v1212_v20, %v1213_v19  ;;  %v861_v28 = vmul.f32 %v1399_v63, %v821_v11  ;;  %v672_v23 = vadd.f32 %v671_v5, %v670_v6  ;;  %1414 = vpow2.f32 %v466_v34  ;;  %v1409_v33 = vpop.eup %1408 }
  0x7c   :  { %v677_v24 = vadd.f32 %v676_v62, %v675_v30  ;;  %1416 = vpow2.f32 %v470_v16  ;;  %v571_v43 = vrot.slane %v1962_v1, 5  ;;  %v1975_v31 = vpop.eup %1410  ;;  %v572_v14 = vrot.slane %v1409_v33, 5 }
  0x7d   :  { %1215 = vmax.xlane.f32.xlu0 %v1214_v45  ;;  %v975_v32 = vcombine.high %v860_v38, %v861_v28  ;;  %1418 = vrcp.f32 %v672_v23  ;;  %v303_v56 = vrot.slane %v302_v35, 1  ;;  %v1413_v36 = vpop.eup %1412  ;;  %v351_v63 = vsel %vm188_vm1, %v1973_v39, -inf }
  0x7e   :  { %v678_v37 = vrot.slane %v677_v24, 1  ;;  %1420 = vpow2.f32 %v1287_v46  ;;  %v573_v26 = vsel %vm528_vm3, %v571_v43, %v572_v14  ;;  %v311_v48 = vmax.f32 %v309_v3, %v310_v41 }
  0x7f   :  { %v982_v10 = vrot.slane %v975_v32, %v1768_v40  ;;  %v708_v42 = vsel %vm609_vm4, %v573_v26, 0.0  ;;  %v304_v9 = vmax.f32 %v302_v35, %v303_v56  ;;  %1422 = vrcp.f32 %v135_v29 }
  0x80   :  { %v679_v18 = vadd.f32 %v678_v37, %v677_v24  ;;  %v709_v52 = vrot.slane %v708_v42, 4  ;;  %v312_v51 = vrot.slane %v311_v48, 1  ;;  %v140_v54 = vadd.f32 1.0, %v1413_v36 }
  0x81   :  { %v989_v46 = vrot.slane %v982_v10, %v1768_v40  ;;  %v392_v47 = vsub.f32 %v1911_v25, %v304_v9  ;;  %v394_v49 = vsub.f32 %v1916_v17, %v304_v9  ;;  %v352_v3 = vmax.f32 %v350_v61, %v351_v63 }
  0x82   :  { %1424 = vrcp.f32 %v679_v18  ;;  %v710_v35 = vadd.f32 %v709_v52, %v708_v42  ;;  %v1284_v55 = vmul.f32 -1.442695, %v1911_v25  ;;  %v313_v57 = vmax.f32 %v311_v48, %v312_v51 }
  0x83   :  { %v1065_v59 = vmax.f32 %v875_v53, %v989_v46  ;;  %v456_v6 = vmul.f32 1.442695, %v392_v47  ;;  %v460_v60 = vmul.f32 1.442695, %v394_v49  ;;  %v353_v12 = vrot.slane %v352_v3, 4 }
  0x84   :  { %v711_v8 = vrot.slane %v710_v35, 2  ;;  %v359_v13 = vsel %vm186_vm0, %v1990_v50, -inf  ;;  %v360_v15 = vsel %vm188_vm1, %v1995_v58, -inf  ;;  %v393_v25 = vsub.f32 %v1925_v2, %v313_v57 }
  0x85   :  { %v1998_v17 = vpop.eup %1414  ;;  %1079 = vst.msk [vmem:[#allocation2 + $0xa] sm:$0x3] %vm1522_vm2, %v1065_v59  ;;  %v395_v5 = vsub.f32 %v1937_v21, %v313_v57  ;;  %1426 = vpow2.f32 %v456_v6  ;;  %v354_v19 = vmax.f32 %v352_v3, %v353_v12  ;;  %v361_v23 = vmax.f32 %v359_v13, %v360_v15 }
  0x86   :  { %v1417_v30 = vpop.eup %1416  ;;  %v574_v11 = vrot.slane %v1998_v17, 5  ;;  %v712_v20 = vadd.f32 %v711_v8, %v710_v35  ;;  %1428 = vpow2.f32 %v460_v60  ;;  %v458_v45 = vmul.f32 1.442695, %v393_v25 }
  0x87   :  { %v1419_v34 = vpop.eup %1418  ;;  %v575_v16 = vrot.slane %v1417_v30, 5  ;;  %v462_v28 = vmul.f32 1.442695, %v395_v5  ;;  %1430 = vrcp.f32 %v140_v54  ;;  %v355_v43 = vrot.slane %v354_v19, 2 }
  0x88   :  { %v1421_v38 = vpop.eup %1420  ;;  %v767_v62 = vmul.f32 %v1419_v34, %v1918_v0  ;;  %v713_v24 = vrot.slane %v712_v20, 1  ;;  %1432 = vpow2.f32 %v458_v45  ;;  %v362_v29 = vrot.slane %v361_v23, 4 }
  0x89   :  { %v576_v33 = vsel %vm528_vm3, %v574_v11, %v575_v16  ;;  %v1423_v14 = vpop.eup %1422  ;;  %1434 = vpow2.f32 %v462_v28  ;;  %v356_v41 = vmax.f32 %v354_v19, %v355_v43  ;;  %v141_v10 = vadd.f32 1.0, %v1421_v38  ;;  %v874_v43 = vld [vmem:[#allocation2 + $0x8] sm:$0x3] }
  0x8a   :  { %v818_v32 = vrot.slane %v767_v62, 1  ;;  %v715_v21 = vsel %vm609_vm4, %v576_v33, 0.0  ;;  %v714_v37 = vadd.f32 %v713_v24, %v712_v20  ;;  %1436 = vpow2.f32 %v1284_v55 }
  0x8b   :  { %v716_v56 = vrot.slane %v715_v21, 4  ;;  %v1285_v26 = vmul.f32 -1.442695, %v1925_v2  ;;  %v363_v61 = vmax.f32 %v361_v23, %v362_v29  ;;  %v357_v48 = vrot.slane %v356_v41, 1 }
  0x8c   :  { %v1425_v36 = vpop.eup %1424  ;;  %v1092_v0 = vld [vmem:[#allocation2 + $0xa] sm:$0x3]  ;;  %v858_v9 = vmul.f32 %v1975_v31, %v818_v32  ;;  %1438 = vrcp.f32 %v714_v37  ;;  %v2029_v31 = vld [vmem:[%s2180_s0 + $0x110] sm:$0x1] }
  0x8d   :  { %v1150_v63 = vrot.slane %v1092_v0, %v1751_v22  ;;  %v1154_v53 = vrot.slane %v1092_v0, %v1830_v7  ;;  %v769_v18 = vmul.f32 %v1425_v36, %v1941_v44  ;;  %v717_v42 = vadd.f32 %v716_v56, %v715_v21  ;;  %v2024_v44 = vld [vmem:[%s2180_s0 + $0x100] sm:$0xff] }
  0x8e   :  { %v364_v46 = vrot.slane %v363_v61, 2  ;;  %1440 = vpow2.f32 %v1285_v26  ;;  %v358_v54 = vmax.f32 %v356_v41, %v357_v48  ;;  %v332_v25 = vsel %vm186_vm0, %v2024_v44, -inf }
  0x8f   :  { %v1232_v52 = vsel %vm188_vm1, %v1150_v63, -inf  ;;  %v1233_v51 = vsel %vm188_vm1, %v1154_v53, -inf  ;;  %v819_v47 = vrot.slane %v769_v18, 1  ;;  %v718_v49 = vrot.slane %v717_v42, 2  ;;  %v2019_v2 = vpop.eup %1426 }
  0x90   :  { %v1234_v59 = vmax.f32 %v1232_v52, %v1233_v51  ;;  %v365_v35 = vmax.f32 %v363_v61, %v364_v46  ;;  %v1429_v3 = vpop.eup %1428  ;;  %1442 = vrcp.f32 %v141_v10  ;;  %v565_v6 = vrot.slane %v2019_v2, 5  ;;  %v2060_v61 = vld [vmem:[%s2180_s0 + $0x118] sm:$0x1] }
  0x91   :  { %v859_v55 = vmul.f32 %v1423_v14, %v819_v47  ;;  %v719_v57 = vadd.f32 %v718_v49, %v717_v42  ;;  %v566_v60 = vrot.slane %v1429_v3, 5  ;;  %v404_v12 = vsub.f32 %v1968_v27, %v358_v54  ;;  %v2034_v15 = vpop.eup %1430 }
  0x92   :  { %1235 = vmax.xlane.f32.xlu1 %v1234_v59  ;;  %v366_v8 = vrot.slane %v365_v35, 1  ;;  %v406_v13 = vsub.f32 %v1973_v39, %v358_v54  ;;  %v333_v5 = vsel %vm188_vm1, %v2029_v31, -inf  ;;  %v2040_v34 = vpop.eup %1432  ;;  %v2046_v39 = vld [vmem:[%s2180_s0 + $0x108] sm:$0xff]  ;;  %v1290_v52 = vmul.f32 -1.442695, %v1968_v27 }
  0x93   :  { %v960_v30 = vcombine.high %v858_v9, %v859_v55  ;;  %v720_v11 = vrot.slane %v719_v57, 1  ;;  %v567_v16 = vsel %vm528_vm3, %v565_v6, %v566_v60  ;;  %v480_v19 = vmul.f32 1.442695, %v404_v12  ;;  %v1435_v62 = vpop.eup %1434 }
  0x94   :  { %v367_v20 = vmax.f32 %v365_v35, %v366_v8  ;;  %v484_v38 = vmul.f32 1.442695, %v406_v13  ;;  %v568_v23 = vrot.slane %v2040_v34, 5  ;;  %v694_v33 = vsel %vm609_vm4, %v567_v16, 0.0  ;;  %v1437_v24 = vpop.eup %1436 }
  0x95   :  { %v967_v45 = vrot.slane %v960_v30, %v1768_v40  ;;  %v721_v28 = vadd.f32 %v720_v11, %v719_v57  ;;  %v569_v32 = vrot.slane %v1435_v62, 5  ;;  %v695_v21 = vrot.slane %v694_v33, 4 }
  0x96   :  { %v405_v29 = vsub.f32 %v1990_v50, %v367_v20  ;;  %v407_v14 = vsub.f32 %v1995_v58, %v367_v20  ;;  %v334_v56 = vmax.f32 %v332_v25, %v333_v5  ;;  %v341_v41 = vsel %vm186_vm0, %v2046_v39, -inf  ;;  %v1439_v36 = vpop.eup %1438 }
  0x97   :  { %v974_v37 = vrot.slane %v967_v45, %v1768_v40  ;;  %1444 = vrcp.f32 %v721_v28  ;;  %v570_v0 = vsel %vm528_vm3, %v568_v23, %v569_v32  ;;  %v696_v10 = vadd.f32 %v695_v21, %v694_v33 }
  0x98   :  { %1446 = vpow2.f32 %v480_v19  ;;  %v482_v26 = vmul.f32 1.442695, %v405_v29  ;;  %v779_v58 = vmul.f32 %v1439_v36, %v1962_v1  ;;  %v701_v53 = vsel %vm609_vm4, %v570_v0, 0.0  ;;  %v1441_v18 = vpop.eup %1440 }
  0x99   :  { %v1064_v63 = vmax.f32 %v874_v43, %v974_v37  ;;  %1448 = vpow2.f32 %v484_v38  ;;  %v697_v42 = vrot.slane %v696_v10, 2  ;;  %v702_v9 = vrot.slane %v701_v53, 4 }
  0x9a   :  { %1450 = vpow2.f32 %v482_v26  ;;  %v486_v48 = vmul.f32 1.442695, %v407_v14  ;;  %v1443_v46 = vpop.eup %1442  ;;  %v335_v51 = vrot.slane %v334_v56, 4  ;;  %v342_v47 = vsel %vm188_vm1, %v2060_v61, -inf }
  0x9b   :  { %1078 = vst.msk [vmem:[#allocation2 + $0x8] sm:$0x3] %vm1522_vm2, %v1064_v63  ;;  %v138_v49 = vadd.f32 1.0, %v1437_v24  ;;  %v698_v1 = vadd.f32 %v697_v42, %v696_v10  ;;  %v703_v59 = vadd.f32 %v702_v9, %v701_v53  ;;  %v139_v54 = vadd.f32 1.0, %v1441_v18 }
  0x9c   :  { %1452 = vpow2.f32 %v486_v48  ;;  %v336_v35 = vmax.f32 %v334_v56, %v335_v51  ;;  %v343_v3 = vmax.f32 %v341_v41, %v342_v47  ;;  %v824_v55 = vrot.slane %v779_v58, 1 }
  0x9d   :  { %v699_v57 = vrot.slane %v698_v1, 1  ;;  %v704_v6 = vrot.slane %v703_v59, 2  ;;  %1454 = vpow2.f32 %v1290_v52  ;;  %v1291_v30 = vmul.f32 -1.442695, %v1990_v50 }
  0x9e   :  { %v337_v60 = vrot.slane %v336_v35, 2  ;;  %v344_v8 = vrot.slane %v343_v3, 4  ;;  %1456 = vrcp.f32 %v138_v49  ;;  %v864_v19 = vmul.f32 %v2034_v15, %v824_v55 }
  0x9f   :  { %v700_v12 = vadd.f32 %v699_v57, %v698_v1  ;;  %v705_v27 = vadd.f32 %v704_v6, %v703_v59  ;;  %1458 = vrcp.f32 %v139_v54  ;;  %v877_v54 = vld [vmem:[#allocation2 + $0xe] sm:$0x3] }
  0xa0   :  { %v338_v11 = vmax.f32 %v336_v35, %v337_v60  ;;  %v345_v25 = vmax.f32 %v343_v3, %v344_v8 }
  0xa1   :  { %v1445_v13 = vpop.eup %1444  ;;  %v706_v38 = vrot.slane %v705_v27, 1  ;;  %1460 = vrcp.f32 %v700_v12 }
  0xa2   :  { %v2070_v5 = vpop.eup %1446  ;;  %v1091_v16 = vld [vmem:[#allocation2 + $0x8] sm:$0x3]  ;;  %v781_v20 = vmul.f32 %v1445_v13, %v1998_v17  ;;  %v339_v33 = vrot.slane %v338_v11, 1  ;;  %v346_v21 = vrot.slane %v345_v25, 2 }
  0xa3   :  { %v1449_v62 = vpop.eup %1448  ;;  %v1142_v45 = vrot.slane %v1091_v16, %v1751_v22  ;;  %v1146_v28 = vrot.slane %v1091_v16, %v1830_v7  ;;  %v583_v23 = vrot.slane %v2070_v5, 5  ;;  %v707_v43 = vadd.f32 %v706_v38, %v705_v27 }
  0xa4   :  { %v2077_v50 = vpop.eup %1450  ;;  %v825_v24 = vrot.slane %v781_v20, 1  ;;  %v584_v32 = vrot.slane %v1449_v62, 5  ;;  %v340_v14 = vmax.f32 %v338_v11, %v339_v33  ;;  %v347_v26 = vmax.f32 %v345_v25, %v346_v21 }
  0xa5   :  { %v1227_v17 = vsel %vm188_vm1, %v1142_v45, -inf  ;;  %v1228_v15 = vsel %vm188_vm1, %v1146_v28, -inf  ;;  %v586_v29 = vrot.slane %v2077_v50, 5  ;;  %1462 = vrcp.f32 %v707_v43 }
  0xa6   :  { %v1453_v37 = vpop.eup %1452  ;;  %v1229_v56 = vmax.f32 %v1227_v17, %v1228_v15  ;;  %v865_v41 = vmul.f32 %v1443_v46, %v825_v24  ;;  %v585_v36 = vsel %vm528_vm3, %v583_v23, %v584_v32  ;;  %v400_v63 = vsub.f32 %v2024_v44, %v340_v14 }
  0xa7   :  { %v587_v0 = vrot.slane %v1453_v37, 5  ;;  %v736_v10 = vsel %vm609_vm4, %v585_v36, 0.0  ;;  %1464 = vpow2.f32 %v1291_v30  ;;  %v402_v18 = vsub.f32 %v2029_v31, %v340_v14  ;;  %v1455_v42 = vpop.eup %1454  ;;  %v876_v36 = vld [vmem:[#allocation2 + $0xc] sm:$0x3] }
  0xa8   :  { %1230 = vmax.xlane.f32.xlu0 %v1229_v56  ;;  %v1005_v58 = vcombine.high %v864_v19, %v865_v41  ;;  %v737_v53 = vrot.slane %v736_v10, 4  ;;  %v348_v48 = vrot.slane %v347_v26, 1  ;;  %v472_v46 = vmul.f32 1.442695, %v400_v63  ;;  %v1457_v52 = vpop.eup %1456 }
  0xa9   :  { %v588_v9 = vsel %vm528_vm3, %v586_v29, %v587_v0  ;;  %v476_v1 = vmul.f32 1.442695, %v402_v18  ;;  %v1459_v59 = vpop.eup %1458  ;;  %v144_v45 = vadd.f32 1.0, %v1455_v42  ;;  %v1288_v14 = vmul.f32 -1.442695, %v2024_v44 }
  0xaa   :  { %v1012_v51 = vrot.slane %v1005_v58, %v1768_v40  ;;  %v738_v47 = vadd.f32 %v737_v53, %v736_v10  ;;  %v743_v49 = vsel %vm609_vm4, %v588_v9, 0.0  ;;  %v349_v3 = vmax.f32 %v347_v26, %v348_v48 }
  0xab   :  { %v744_v35 = vrot.slane %v743_v49, 4  ;;  %1466 = vpow2.f32 %v472_v46  ;;  %v1461_v55 = vpop.eup %1460  ;;  %v1289_v58 = vmul.f32 -1.442695, %v2046_v39 }
  0xac   :  { %v1019_v31 = vrot.slane %v1012_v51, %v1768_v40  ;;  %v739_v57 = vrot.slane %v738_v47, 2  ;;  %1468 = vpow2.f32 %v476_v1  ;;  %v775_v6 = vmul.f32 %v1461_v55, %v2019_v2 }
  0xad   :  { %v745_v60 = vadd.f32 %v744_v35, %v743_v49  ;;  %v401_v8 = vsub.f32 %v2046_v39, %v349_v3  ;;  %v403_v12 = vsub.f32 %v2060_v61, %v349_v3 }
  0xae   :  { %v1067_v27 = vmax.f32 %v877_v54, %v1019_v31  ;;  %v740_v13 = vadd.f32 %v739_v57, %v738_v47  ;;  %v822_v30 = vrot.slane %v775_v6, 1 }
  0xaf   :  { %v746_v11 = vrot.slane %v745_v60, 2  ;;  %v474_v25 = vmul.f32 1.442695, %v401_v8  ;;  %v478_v16 = vmul.f32 1.442695, %v403_v12  ;;  %v1463_v20 = vpop.eup %1462 }
  0xb0   :  { %1081 = vst.msk [vmem:[#allocation2 + $0xe] sm:$0x3] %vm1522_vm2, %v1067_v27  ;;  %v741_v19 = vrot.slane %v740_v13, 1  ;;  %v777_v38 = vmul.f32 %v1463_v20, %v2040_v34  ;;  %v862_v23 = vmul.f32 %v1457_v52, %v822_v30 }
  0xb1   :  { %v747_v62 = vadd.f32 %v746_v11, %v745_v60  ;;  %1470 = vpow2.f32 %v474_v25  ;;  %v1465_v2 = vpop.eup %1464 }
  0xb2   :  { %v742_v28 = vadd.f32 %v741_v19, %v740_v13  ;;  %1472 = vpow2.f32 %v478_v16  ;;  %v823_v61 = vrot.slane %v777_v38, 1  ;;  %v145_v32 = vadd.f32 1.0, %v1465_v2 }
  0xb3   :  { %v748_v33 = vrot.slane %v747_v62, 1 }
  0xb4   :  { %1474 = vrcp.f32 %v742_v28  ;;  %v863_v43 = vmul.f32 %v1459_v59, %v823_v61 }
  0xb5   :  { %v2096_v24 = vpop.eup %1466  ;;  %v749_v21 = vadd.f32 %v748_v33, %v747_v62  ;;  %1476 = vrcp.f32 %v144_v45 }
  0xb6   :  { %v1469_v17 = vpop.eup %1468  ;;  %v577_v15 = vrot.slane %v2096_v24, 5  ;;  %v990_v29 = vcombine.high %v862_v23, %v863_v43  ;;  %v879_v43 = vld [vmem:[#allocation2 + $0x12] sm:$0x3] }
  0xb7   :  { %v1094_v34 = vld [vmem:[#allocation2 + $0xe] sm:$0x3]  ;;  %1478 = vrcp.f32 %v749_v21  ;;  %v578_v37 = vrot.slane %v1469_v17, 5 }
  0xb8   :  { %v1166_v56 = vrot.slane %v1094_v34, %v1751_v22  ;;  %v1170_v41 = vrot.slane %v1094_v34, %v1830_v7  ;;  %v997_v0 = vrot.slane %v990_v29, %v1768_v40  ;;  %1480 = vrcp.f32 %v145_v32 }
  0xb9   :  { %v579_v10 = vsel %vm528_vm3, %v577_v15, %v578_v37  ;;  %1482 = vpow2.f32 %v1288_v14 }
  0xba   :  { %v1242_v26 = vsel %vm188_vm1, %v1166_v56, -inf  ;;  %v1243_v63 = vsel %vm188_vm1, %v1170_v41, -inf  ;;  %v722_v53 = vsel %vm609_vm4, %v579_v10, 0.0  ;;  %v1004_v42 = vrot.slane %v997_v0, %v1768_v40 }
  0xbb   :  { %v2108_v44 = vpop.eup %1470  ;;  %v1244_v18 = vmax.f32 %v1242_v26, %v1243_v63  ;;  %v723_v9 = vrot.slane %v722_v53, 4  ;;  %1484 = vpow2.f32 %v1289_v58 }
  0xbc   :  { %v1473_v48 = vpop.eup %1472  ;;  %v580_v46 = vrot.slane %v2108_v44, 5  ;;  %v1066_v52 = vmax.f32 %v876_v36, %v1004_v42 }
  0xbd   :  { %1245 = vmax.xlane.f32.xlu1 %v1244_v18  ;;  %v581_v51 = vrot.slane %v1473_v48, 5  ;;  %v724_v47 = vadd.f32 %v723_v9, %v722_v53 }
  0xbe   :  { %v1475_v49 = vpop.eup %1474  ;;  %1080 = vst.msk [vmem:[#allocation2 + $0xc] sm:$0x3] %vm1522_vm2, %v1066_v52 }
  0xbf   :  { %v787_v39 = vmul.f32 %v1475_v49, %v2070_v5  ;;  %v582_v1 = vsel %vm528_vm3, %v580_v46, %v581_v51  ;;  %v725_v59 = vrot.slane %v724_v47, 2  ;;  %v1477_v54 = vpop.eup %1476  ;;  %v878_v46 = vld [vmem:[#allocation2 + $0x10] sm:$0x3] }
  0xc0   :  { %v729_v35 = vsel %vm609_vm4, %v582_v1, 0.0 }
  0xc1   :  { %v1479_v3 = vpop.eup %1478  ;;  %v828_v55 = vrot.slane %v787_v39, 1  ;;  %v726_v31 = vadd.f32 %v725_v59, %v724_v47  ;;  %v730_v57 = vrot.slane %v729_v35, 4 }
  0xc2   :  { %v789_v6 = vmul.f32 %v1479_v3, %v2077_v50  ;;  %v1481_v60 = vpop.eup %1480 }
  0xc3   :  { %v727_v8 = vrot.slane %v726_v31, 1  ;;  %v731_v12 = vadd.f32 %v730_v57, %v729_v35  ;;  %v868_v13 = vmul.f32 %v1477_v54, %v828_v55  ;;  %v1483_v30 = vpop.eup %1482 }
  0xc4   :  { %v829_v27 = vrot.slane %v789_v6, 1  ;;  %v142_v45 = vadd.f32 1.0, %v1483_v30 }
  0xc5   :  { %v728_v11 = vadd.f32 %v727_v8, %v726_v31  ;;  %v732_v5 = vrot.slane %v731_v12, 2  ;;  %v1093_v25 = vld [vmem:[#allocation2 + $0xc] sm:$0x3]  ;;  %v1485_v62 = vpop.eup %1484 }
  0xc6   :  { %v869_v16 = vmul.f32 %v1481_v60, %v829_v27  ;;  %v1158_v20 = vrot.slane %v1093_v25, %v1751_v22  ;;  %v1162_v19 = vrot.slane %v1093_v25, %v1830_v7  ;;  %v143_v32 = vadd.f32 1.0, %v1485_v62 }
  0xc7   :  { %v733_v38 = vadd.f32 %v732_v5, %v731_v12  ;;  %1486 = vrcp.f32 %v728_v11 }
  0xc8   :  { %v1035_v2 = vcombine.high %v868_v13, %v869_v16  ;;  %v1237_v50 = vsel %vm188_vm1, %v1158_v20, -inf  ;;  %v1238_v28 = vsel %vm188_vm1, %v1162_v19, -inf  ;;  %1488 = vrcp.f32 %v142_v45 }
  0xc9   :  { %v734_v61 = vrot.slane %v733_v38, 1  ;;  %v1239_v23 = vmax.f32 %v1237_v50, %v1238_v28 }
  0xca   :  { %v1042_v33 = vrot.slane %v1035_v2, %v1768_v40 }
  0xcb   :  { %v735_v21 = vadd.f32 %v734_v61, %v733_v38  ;;  %1240 = vmax.xlane.f32.xlu0 %v1239_v23 }
  0xcc   :  { %v1049_v17 = vrot.slane %v1042_v33, %v1768_v40 }
  0xcd   :  { %1490 = vrcp.f32 %v735_v21 }
  0xce   :  { %v1069_v15 = vmax.f32 %v879_v43, %v1049_v17  ;;  %1492 = vrcp.f32 %v143_v32 }
  0xd0   :  { %1083 = vst.msk [vmem:[#allocation2 + $0x12] sm:$0x3] %vm1522_vm2, %v1069_v15 }
  0xd1   :  { %v1487_v34 = vpop.eup %1486 }
  0xd2   :  { %v783_v29 = vmul.f32 %v1487_v34, %v2096_v24  ;;  %v1489_v14 = vpop.eup %1488 }
  0xd4   :  { %v826_v37 = vrot.slane %v783_v29, 1 }
  0xd6   :  { %v866_v18 = vmul.f32 %v1489_v14, %v826_v37 }
  0xd7   :  { %v1491_v56 = vpop.eup %1490  ;;  %v1096_v41 = vld [vmem:[#allocation2 + $0x12] sm:$0x3] }
  0xd8   :  { %v1182_v36 = vrot.slane %v1096_v41, %v1751_v22  ;;  %v1186_v0 = vrot.slane %v1096_v41, %v1830_v7  ;;  %v785_v10 = vmul.f32 %v1491_v56, %v2108_v44  ;;  %v1493_v26 = vpop.eup %1492 }
  0xda   :  { %v1252_v63 = vsel %vm188_vm1, %v1182_v36, -inf  ;;  %v1253_v58 = vsel %vm188_vm1, %v1186_v0, -inf  ;;  %v827_v53 = vrot.slane %v785_v10, 1 }
  0xdb   :  { %v1254_v42 = vmax.f32 %v1252_v63, %v1253_v58 }
  0xdc   :  { %v867_v9 = vmul.f32 %v1493_v26, %v827_v53 }
  0xdd   :  { %1255 = vmax.xlane.f32.xlu1 %v1254_v42 }
  0xde   :  { %v1020_v24 = vcombine.high %v866_v18, %v867_v9 }
  0xe0   :  { %v1027_v48 = vrot.slane %v1020_v24, %v1768_v40 }
  0xe2   :  { %v1034_v52 = vrot.slane %v1027_v48, %v1768_v40 }
  0xe4   :  { %v1068_v51 = vmax.f32 %v878_v46, %v1034_v52 }
  0xe6   :  { %1082 = vst.msk [vmem:[#allocation2 + $0x10] sm:$0x3] %vm1522_vm2, %v1068_v51 }
  0xe7   :  { %v1221_v44 = vpop.xlane.xlu1 %1220 }
  0xe8   :  { %1260 = vst.msk [vmem:[%s2181_s1 + $0x2] sm:$0x1] %vm1257_vm5, %v1221_v44 }
  0xed   :  { %v1095_v47 = vld [vmem:[#allocation2 + $0x10] sm:$0x3]  ;;  %v1211_v49 = vpop.xlane.xlu0 %1210 }
  0xee   :  { %v1174_v39 = vrot.slane %v1095_v47, %v1751_v22  ;;  %v1178_v1 = vrot.slane %v1095_v47, %v1830_v7  ;;  %1258 = vst.msk [vmem:[%s2181_s1] sm:$0x1] %vm1257_vm5, %v1211_v49 }
  0xf0   :  { %v1247_v4 = vsel %vm188_vm1, %v1174_v39, -inf  ;;  %v1248_v40 = vsel %vm188_vm1, %v1178_v1, -inf }
  0xf1   :  { %v1249_v59 = vmax.f32 %v1247_v4, %v1248_v40 }
  0xf3   :  { %1250 = vmax.xlane.f32.xlu0 %v1249_v59 }
  0xf6   :  { %v1226_v54 = vpop.xlane.xlu1 %1225 }
  0xf7   :  { %1261 = vst.msk [vmem:[%s2181_s1 + $0x3] sm:$0x1] %vm1257_vm5, %v1226_v54 }
 0x10a   :  { %v1216_v22 = vpop.xlane.xlu0 %1215 }
 0x10b   :  { %1259 = vst.msk [vmem:[%s2181_s1 + $0x1] sm:$0x1] %vm1257_vm5, %v1216_v22 }
 0x11f   :  { %v1236_v7 = vpop.xlane.xlu1 %1235 }
 0x120   :  { %1263 = vst.msk [vmem:[%s2181_s1 + $0x5] sm:$0x1] %vm1257_vm5, %v1236_v7 }
 0x135   :  { %v1231_v35 = vpop.xlane.xlu0 %1230 }
 0x136   :  { %1262 = vst.msk [vmem:[%s2181_s1 + $0x4] sm:$0x1] %vm1257_vm5, %v1231_v35 }
 0x14a   :  { %v1246_v3 = vpop.xlane.xlu1 %1245 }
 0x14b   :  { %1265 = vst.msk [vmem:[%s2181_s1 + $0x7] sm:$0x1] %vm1257_vm5, %v1246_v3 }
 0x158   :  { %v1241_v55 = vpop.xlane.xlu0 %1240 }
 0x159   :  { %1264 = vst.msk [vmem:[%s2181_s1 + $0x6] sm:$0x1] %vm1257_vm5, %v1241_v55 }
 0x16a   :  { %v1256_v31 = vpop.xlane.xlu1 %1255 }
 0x16b   :  { %1267 = vst.msk [vmem:[%s2181_s1 + $0x9] sm:$0x1] %vm1257_vm5, %v1256_v31 }
 0x180   :  { %v1251_v57 = vpop.xlane.xlu0 %1250 }
 0x181   :  { %1266 = vst.msk [vmem:[%s2181_s1 + $0x8] sm:$0x1] %vm1257_vm5, %v1251_v57 }

</bundles_post_ra>
